<compile_context>
chip_gen: v6e
topology: v6e:2x2x1
jax: 0.10.0
libtpu: 0.0.40
codegen_flags: <defaults>
</compile_context>

<pallas_src>
import math
from functools import partial

import jax
import jax.numpy as jnp
from jax.experimental import pallas as pl
from jax.experimental.pallas import tpu as pltpu


def _attention_layer_kernel(q_ref, k_ref, v_ref, mask_ref,
                            wq_ref, bq_ref, wk_ref, bk_ref,
                            wv_ref, bv_ref, wo_ref, bo_ref,
                            out_ref, attn_ref, *, scale):
    # Block shapes (one batch, one L-tile, ONE head per grid step):
    #   q_ref:    (1, TL, Dm)     k_ref/v_ref: (1, S, Dm)
    #   mask_ref: (1, 1, TL, S)   attn_ref:    (1, 1, TL, S)
    #   wq/wk/wv: (1, Dm, E)      bq/bk/bv:    (1, 1, E)
    #   wo_ref:   (1, E, Dm)      bo_ref:      (1, Dm)
    #   out_ref:  (1, TL, Dm)   (resident accumulator across the head axis)
    h = pl.program_id(2)

    # bf16 operands for the MXU, f32 accumulation.
    q = q_ref[0].astype(jnp.bfloat16)          # (TL, Dm)
    k = k_ref[0].astype(jnp.bfloat16)          # (S, Dm)
    v = v_ref[0].astype(jnp.bfloat16)          # (S, Dm)
    wq = wq_ref[0].astype(jnp.bfloat16)        # (Dm, E)
    wk = wk_ref[0].astype(jnp.bfloat16)        # (Dm, E)
    wv = wv_ref[0].astype(jnp.bfloat16)        # (Dm, E)
    wo = wo_ref[0].astype(jnp.bfloat16)        # (E, Dm)

    # Per-head input projections (single dense matmul each; bias added once).
    qh = jnp.dot(q, wq, preferred_element_type=jnp.float32) + bq_ref[0]   # (TL, E)
    kh = jnp.dot(k, wk, preferred_element_type=jnp.float32) + bk_ref[0]   # (S, E)
    vh = jnp.dot(v, wv, preferred_element_type=jnp.float32) + bv_ref[0]   # (S, E)

    # scores = qh @ kh^T with no explicit transpose (MXU consumes it directly).
    scores = jax.lax.dot_general(
        qh.astype(jnp.bfloat16), kh.astype(jnp.bfloat16),
        dimension_numbers=(((1,), (1,)), ((), ())),
        preferred_element_type=jnp.float32)                               # (TL, S)

    # Softmax with additive mask, all in f32.
    logits = scale * scores + mask_ref[0, 0]                              # (TL, S)
    logits = logits - jnp.max(logits, axis=-1, keepdims=True)
    p = jnp.exp(logits)
    a = p * pl.reciprocal(jnp.sum(p, axis=-1, keepdims=True), approx=True)
    attn_ref[0, 0] = a

    # Attention-weighted values, then this head's slice of the out projection.
    ctx = jnp.dot(a.astype(jnp.bfloat16), vh.astype(jnp.bfloat16),
                  preferred_element_type=jnp.float32)                     # (TL, E)
    contrib = jnp.dot(ctx.astype(jnp.bfloat16), wo,
                      preferred_element_type=jnp.float32)                 # (TL, Dm)

    @pl.when(h == 0)
    def _():
        out_ref[0] = contrib + bo_ref[...]

    @pl.when(h != 0)
    def _():
        out_ref[0] = out_ref[0] + contrib


def attention_layer2(queries, keys, values, attn_mask, params, n_heads):
    """Pallas implementation of AttentionLayer2.forward (eval mode).

    queries: (B, L, Dm) f32, keys/values: (B, S, Dm) f32,
    attn_mask: (B, H, L, S) f32 (additive mask).
    params: dict with wq, bq, wk, bk, wv, bv, wo, bo (weights stored (in, out)).
    Returns (out, attn): (B, L, Dm), (B, H, L, S).
    """
    B, L, Dm = queries.shape
    S = keys.shape[1]
    H = n_heads
    E = Dm // H
    scale = 1.0 / math.sqrt(E)

    # Wrapper-side layout plumbing (cheap, once per call): present the weights
    # head-major so the kernel never slices/concats along the lane dimension.
    wq_h = params["wq"].reshape(Dm, H, E).transpose(1, 0, 2)   # (H, Dm, E)
    wk_h = params["wk"].reshape(Dm, H, E).transpose(1, 0, 2)   # (H, Dm, E)
    wv_h = params["wv"].reshape(Dm, H, E).transpose(1, 0, 2)   # (H, Dm, E)
    wo_h = params["wo"].reshape(H, E, Dm)                      # (H, E, Dm)
    bq_h = params["bq"].reshape(H, 1, E)
    bk_h = params["bk"].reshape(H, 1, E)
    bv_h = params["bv"].reshape(H, 1, E)
    bo = params["bo"].reshape(1, Dm)

    # Query-row tiling: gives the pipeline / megacore something to shard on
    # when L is large; falls back to a single full-L tile for small L.
    TILE_L = 128 if (L % 128 == 0) else L
    n_lt = L // TILE_L

    kernel = partial(_attention_layer_kernel, scale=scale)

    grid_spec = pltpu.PrefetchScalarGridSpec(
        num_scalar_prefetch=0,
        grid=(B, n_lt, H),                                   # head axis = reduction, last
        in_specs=[
            pl.BlockSpec((1, TILE_L, Dm), lambda b, lt, h: (b, lt, 0)),      # queries
            pl.BlockSpec((1, S, Dm), lambda b, lt, h: (b, 0, 0)),            # keys
            pl.BlockSpec((1, S, Dm), lambda b, lt, h: (b, 0, 0)),            # values
            pl.BlockSpec((1, 1, TILE_L, S), lambda b, lt, h: (b, h, lt, 0)), # mask
            pl.BlockSpec((1, Dm, E), lambda b, lt, h: (h, 0, 0)),            # wq_h
            pl.BlockSpec((1, 1, E), lambda b, lt, h: (h, 0, 0)),             # bq_h
            pl.BlockSpec((1, Dm, E), lambda b, lt, h: (h, 0, 0)),            # wk_h
            pl.BlockSpec((1, 1, E), lambda b, lt, h: (h, 0, 0)),             # bk_h
            pl.BlockSpec((1, Dm, E), lambda b, lt, h: (h, 0, 0)),            # wv_h
            pl.BlockSpec((1, 1, E), lambda b, lt, h: (h, 0, 0)),             # bv_h
            pl.BlockSpec((1, E, Dm), lambda b, lt, h: (h, 0, 0)),            # wo_h
            pl.BlockSpec((1, Dm), lambda b, lt, h: (0, 0)),                  # bo
        ],
        out_specs=[
            pl.BlockSpec((1, TILE_L, Dm), lambda b, lt, h: (b, lt, 0)),      # out (acc over h)
            pl.BlockSpec((1, 1, TILE_L, S), lambda b, lt, h: (b, h, lt, 0)), # attn
        ],
    )

    out, attn = pl.pallas_call(
        kernel,
        out_shape=(
            jax.ShapeDtypeStruct((B, L, Dm), jnp.float32),
            jax.ShapeDtypeStruct((B, H, L, S), jnp.float32),
        ),
        grid_spec=grid_spec,
        compiler_params=pltpu.CompilerParams(
            dimension_semantics=("parallel", "parallel", "arbitrary"),
            vmem_limit_bytes=32 * 1024 * 1024,
        ),
    )(queries, keys, values, attn_mask,
      wq_h, bq_h, wk_h, bk_h, wv_h, bv_h, wo_h, bo)
    return out, attn


def _reference(queries, keys, values, attn_mask, params, n_heads):
    """Pure-JAX f32 reference of the PyTorch forward (eval mode)."""
    B, L, Dm = queries.shape
    S = keys.shape[1]
    H = n_heads
    E = Dm // H
    q = (queries @ params["wq"] + params["bq"]).reshape(B, L, H, E)
    k = (keys @ params["wk"] + params["bk"]).reshape(B, S, H, E)
    v = (values @ params["wv"] + params["bv"]).reshape(B, S, H, E)
    scale = 1.0 / math.sqrt(E)
    scores = jnp.einsum("blhe,bshe->bhls", q, k)
    a = jax.nn.softmax(scale * scores + attn_mask, axis=-1)
    out = jnp.einsum("bhls,bshd->blhd", a, v).reshape(B, L, Dm)
    return out @ params["wo"] + params["bo"], a


if __name__ == "__main__":
    B, L, S = 2, 8, 8
    hidden_dim, n_heads = 32, 4

    key = jax.random.PRNGKey(0)
    ks = jax.random.split(key, 12)

    # Deterministic synthetic parameters (stored as (in, out) so x @ W + b).
    params = {
        "wq": 0.1 * jax.random.normal(ks[0], (hidden_dim, hidden_dim), jnp.float32),
        "bq": 0.1 * jax.random.normal(ks[1], (1, hidden_dim), jnp.float32),
        "wk": 0.1 * jax.random.normal(ks[2], (hidden_dim, hidden_dim), jnp.float32),
        "bk": 0.1 * jax.random.normal(ks[3], (1, hidden_dim), jnp.float32),
        "wv": 0.1 * jax.random.normal(ks[4], (hidden_dim, hidden_dim), jnp.float32),
        "bv": 0.1 * jax.random.normal(ks[5], (1, hidden_dim), jnp.float32),
        "wo": 0.1 * jax.random.normal(ks[6], (hidden_dim, hidden_dim), jnp.float32),
        "bo": 0.1 * jax.random.normal(ks[7], (1, hidden_dim), jnp.float32),
    }

    queries = jax.random.normal(ks[8], (B, L, hidden_dim), jnp.float32)
    keys_in = jax.random.normal(ks[9], (B, S, hidden_dim), jnp.float32)
    values = jax.random.normal(ks[10], (B, S, hidden_dim), jnp.float32)
    attn_mask = 0.5 * jax.random.normal(ks[11], (B, n_heads, L, S), jnp.float32)

    out, attn = attention_layer2(queries, keys_in, values, attn_mask, params, n_heads)
    out, attn = jax.block_until_ready(out), jax.block_until_ready(attn)

    ref_out, ref_attn = _reference(queries, keys_in, values, attn_mask, params, n_heads)
    # Tolerance relaxed vs the f32 reference: MXU operands are bf16 (f32 accumulate)
    # and the softmax denominator uses the approximate EUP reciprocal.
    assert jnp.allclose(out, ref_out, rtol=2e-2, atol=2e-2)
    assert jnp.allclose(attn, ref_attn, rtol=2e-2, atol=2e-2)

    print("KERNEL_OK")
</pallas_src>

<mosaic_0001>
module attributes {stable_mosaic.version = 11 : i64} {
  func.func @_attention_layer_kernel(%arg0: i32, %arg1: i32, %arg2: i32, %arg3: memref<1x8x32xf32, #tpu.memory_space<vmem>>, %arg4: memref<1x8x32xf32, #tpu.memory_space<vmem>>, %arg5: memref<1x8x32xf32, #tpu.memory_space<vmem>>, %arg6: memref<1x1x8x8xf32, #tpu.memory_space<vmem>>, %arg7: memref<1x32x8xf32, #tpu.memory_space<vmem>>, %arg8: memref<1x1x8xf32, #tpu.memory_space<vmem>>, %arg9: memref<1x32x8xf32, #tpu.memory_space<vmem>>, %arg10: memref<1x1x8xf32, #tpu.memory_space<vmem>>, %arg11: memref<1x32x8xf32, #tpu.memory_space<vmem>>, %arg12: memref<1x1x8xf32, #tpu.memory_space<vmem>>, %arg13: memref<1x8x32xf32, #tpu.memory_space<vmem>>, %arg14: memref<1x32xf32, #tpu.memory_space<vmem>>, %arg15: memref<1x8x32xf32, #tpu.memory_space<vmem>>, %arg16: memref<1x1x8x8xf32, #tpu.memory_space<vmem>>) attributes {dimension_semantics = [#tpu.dimension_semantics<parallel>, #tpu.dimension_semantics<parallel>, #tpu.dimension_semantics<arbitrary>], iteration_bounds = array<i64: 2, 1, 4>, scalar_prefetch = 0 : i64, scratch_operands = 0 : i64, tpu.core_type = #tpu.core_type<tc>, window_params = [{transform_indices = @transform_0, window_bounds = array<i64: 1, 8, 32>}, {transform_indices = @transform_1, window_bounds = array<i64: 1, 8, 32>}, {transform_indices = @transform_2, window_bounds = array<i64: 1, 8, 32>}, {transform_indices = @transform_3, window_bounds = array<i64: 1, 1, 8, 8>}, {transform_indices = @transform_4, window_bounds = array<i64: 1, 32, 8>}, {transform_indices = @transform_5, window_bounds = array<i64: 1, 1, 8>}, {transform_indices = @transform_6, window_bounds = array<i64: 1, 32, 8>}, {transform_indices = @transform_7, window_bounds = array<i64: 1, 1, 8>}, {transform_indices = @transform_8, window_bounds = array<i64: 1, 32, 8>}, {transform_indices = @transform_9, window_bounds = array<i64: 1, 1, 8>}, {transform_indices = @transform_10, window_bounds = array<i64: 1, 8, 32>}, {pipeline_mode = #tpu.pipeline_mode<synchronous>, transform_indices = @transform_11, window_bounds = array<i64: 1, 32>}, {transform_indices = @transform_12, window_bounds = array<i64: 1, 8, 32>}, {transform_indices = @transform_13, window_bounds = array<i64: 1, 1, 8, 8>}]} {
    %c0 = arith.constant 0 : index
    %c0_0 = arith.constant 0 : index
    %c0_1 = arith.constant 0 : index
    %0 = vector.load %arg3[%c0, %c0_0, %c0_1] : memref<1x8x32xf32, #tpu.memory_space<vmem>>, vector<1x8x32xf32>
    %1 = vector.shape_cast %0 : vector<1x8x32xf32> to vector<8x32xf32>
    %2 = arith.truncf %1 : vector<8x32xf32> to vector<8x32xbf16>
    %c0_2 = arith.constant 0 : index
    %c0_3 = arith.constant 0 : index
    %c0_4 = arith.constant 0 : index
    %3 = vector.load %arg4[%c0_2, %c0_3, %c0_4] : memref<1x8x32xf32, #tpu.memory_space<vmem>>, vector<1x8x32xf32>
    %4 = vector.shape_cast %3 : vector<1x8x32xf32> to vector<8x32xf32>
    %5 = arith.truncf %4 : vector<8x32xf32> to vector<8x32xbf16>
    %c0_5 = arith.constant 0 : index
    %c0_6 = arith.constant 0 : index
    %c0_7 = arith.constant 0 : index
    %6 = vector.load %arg5[%c0_5, %c0_6, %c0_7] : memref<1x8x32xf32, #tpu.memory_space<vmem>>, vector<1x8x32xf32>
    %7 = vector.shape_cast %6 : vector<1x8x32xf32> to vector<8x32xf32>
    %8 = arith.truncf %7 : vector<8x32xf32> to vector<8x32xbf16>
    %c0_8 = arith.constant 0 : index
    %c0_9 = arith.constant 0 : index
    %c0_10 = arith.constant 0 : index
    %9 = vector.load %arg7[%c0_8, %c0_9, %c0_10] : memref<1x32x8xf32, #tpu.memory_space<vmem>>, vector<1x32x8xf32>
    %10 = vector.shape_cast %9 : vector<1x32x8xf32> to vector<32x8xf32>
    %11 = arith.truncf %10 : vector<32x8xf32> to vector<32x8xbf16>
    %c0_11 = arith.constant 0 : index
    %c0_12 = arith.constant 0 : index
    %c0_13 = arith.constant 0 : index
    %12 = vector.load %arg9[%c0_11, %c0_12, %c0_13] : memref<1x32x8xf32, #tpu.memory_space<vmem>>, vector<1x32x8xf32>
    %13 = vector.shape_cast %12 : vector<1x32x8xf32> to vector<32x8xf32>
    %14 = arith.truncf %13 : vector<32x8xf32> to vector<32x8xbf16>
    %c0_14 = arith.constant 0 : index
    %c0_15 = arith.constant 0 : index
    %c0_16 = arith.constant 0 : index
    %15 = vector.load %arg11[%c0_14, %c0_15, %c0_16] : memref<1x32x8xf32, #tpu.memory_space<vmem>>, vector<1x32x8xf32>
    %16 = vector.shape_cast %15 : vector<1x32x8xf32> to vector<32x8xf32>
    %17 = arith.truncf %16 : vector<32x8xf32> to vector<32x8xbf16>
    %c0_17 = arith.constant 0 : index
    %c0_18 = arith.constant 0 : index
    %c0_19 = arith.constant 0 : index
    %18 = vector.load %arg13[%c0_17, %c0_18, %c0_19] : memref<1x8x32xf32, #tpu.memory_space<vmem>>, vector<1x8x32xf32>
    %19 = vector.shape_cast %18 : vector<1x8x32xf32> to vector<8x32xf32>
    %20 = arith.truncf %19 : vector<8x32xf32> to vector<8x32xbf16>
    %cst = arith.constant dense<0.000000e+00> : vector<8x8xf32>
    %21 = tpu.matmul %2, %11, %cst {dimension_numbers = #tpu.dot_dimension_numbers<[1], [0], [0], [1], [0, 0, 1, 1], [], []>} : vector<8x32xbf16>, vector<32x8xbf16>, vector<8x8xf32> -> vector<8x8xf32>
    %c0_20 = arith.constant 0 : index
    %c0_21 = arith.constant 0 : index
    %c0_22 = arith.constant 0 : index
    %22 = vector.load %arg8[%c0_20, %c0_21, %c0_22] : memref<1x1x8xf32, #tpu.memory_space<vmem>>, vector<1x1x8xf32>
    %23 = vector.shape_cast %22 : vector<1x1x8xf32> to vector<1x8xf32>
    %24 = vector.broadcast %23 : vector<1x8xf32> to vector<8x8xf32>
    %25 = arith.addf %21, %24 : vector<8x8xf32>
    %cst_23 = arith.constant dense<0.000000e+00> : vector<8x8xf32>
    %26 = tpu.matmul %5, %14, %cst_23 {dimension_numbers = #tpu.dot_dimension_numbers<[1], [0], [0], [1], [0, 0, 1, 1], [], []>} : vector<8x32xbf16>, vector<32x8xbf16>, vector<8x8xf32> -> vector<8x8xf32>
    %c0_24 = arith.constant 0 : index
    %c0_25 = arith.constant 0 : index
    %c0_26 = arith.constant 0 : index
    %27 = vector.load %arg10[%c0_24, %c0_25, %c0_26] : memref<1x1x8xf32, #tpu.memory_space<vmem>>, vector<1x1x8xf32>
    %28 = vector.shape_cast %27 : vector<1x1x8xf32> to vector<1x8xf32>
    %29 = vector.broadcast %28 : vector<1x8xf32> to vector<8x8xf32>
    %30 = arith.addf %26, %29 : vector<8x8xf32>
    %cst_27 = arith.constant dense<0.000000e+00> : vector<8x8xf32>
    %31 = tpu.matmul %8, %17, %cst_27 {dimension_numbers = #tpu.dot_dimension_numbers<[1], [0], [0], [1], [0, 0, 1, 1], [], []>} : vector<8x32xbf16>, vector<32x8xbf16>, vector<8x8xf32> -> vector<8x8xf32>
    %c0_28 = arith.constant 0 : index
    %c0_29 = arith.constant 0 : index
    %c0_30 = arith.constant 0 : index
    %32 = vector.load %arg12[%c0_28, %c0_29, %c0_30] : memref<1x1x8xf32, #tpu.memory_space<vmem>>, vector<1x1x8xf32>
    %33 = vector.shape_cast %32 : vector<1x1x8xf32> to vector<1x8xf32>
    %34 = vector.broadcast %33 : vector<1x8xf32> to vector<8x8xf32>
    %35 = arith.addf %31, %34 : vector<8x8xf32>
    %36 = arith.truncf %25 : vector<8x8xf32> to vector<8x8xbf16>
    %37 = arith.truncf %30 : vector<8x8xf32> to vector<8x8xbf16>
    %cst_31 = arith.constant dense<0.000000e+00> : vector<8x8xf32>
    %38 = tpu.matmul %36, %37, %cst_31 {dimension_numbers = #tpu.dot_dimension_numbers<[1], [1], [0], [0], [0, 0, 1, 0], [], []>} : vector<8x8xbf16>, vector<8x8xbf16>, vector<8x8xf32> -> vector<8x8xf32>
    %cst_32 = arith.constant 0.353553385 : f32
    %39 = vector.broadcast %cst_32 : f32 to vector<8x8xf32>
    %40 = arith.mulf %39, %38 : vector<8x8xf32>
    %c0_33 = arith.constant 0 : index
    %c0_34 = arith.constant 0 : index
    %c0_35 = arith.constant 0 : index
    %c0_36 = arith.constant 0 : index
    %41 = vector.load %arg6[%c0_33, %c0_34, %c0_35, %c0_36] : memref<1x1x8x8xf32, #tpu.memory_space<vmem>>, vector<1x1x8x8xf32>
    %42 = vector.shape_cast %41 : vector<1x1x8x8xf32> to vector<8x8xf32>
    %43 = arith.addf %40, %42 : vector<8x8xf32>
    %cst_37 = arith.constant dense<0xFF800000> : vector<8xf32>
    %44 = vector.multi_reduction <maximumf>, %43, %cst_37 [1] : vector<8x8xf32> to vector<8xf32>
    %45 = vector.shape_cast %44 : vector<8xf32> to vector<8x1xf32>
    %46 = vector.broadcast %45 : vector<8x1xf32> to vector<8x8xf32>
    %47 = arith.subf %43, %46 : vector<8x8xf32>
    %48 = math.exp %47 : vector<8x8xf32>
    %cst_38 = arith.constant dense<0.000000e+00> : vector<8xf32>
    %49 = vector.multi_reduction <add>, %48, %cst_38 [1] : vector<8x8xf32> to vector<8xf32>
    %50 = vector.shape_cast %49 : vector<8xf32> to vector<8x1xf32>
    %51 = tpu.reciprocal %50 {approx = true} : vector<8x1xf32> -> vector<8x1xf32>
    %52 = vector.broadcast %51 : vector<8x1xf32> to vector<8x8xf32>
    %53 = arith.mulf %48, %52 : vector<8x8xf32>
    %c0_39 = arith.constant 0 : index
    %c0_40 = arith.constant 0 : index
    %c0_41 = arith.constant 0 : index
    %c0_42 = arith.constant 0 : index
    %54 = vector.load %arg16[%c0_39, %c0_40, %c0_41, %c0_42] : memref<1x1x8x8xf32, #tpu.memory_space<vmem>>, vector<1x1x8x8xf32>
    %55 = vector.shape_cast %54 : vector<1x1x8x8xf32> to vector<8x8xf32>
    %56 = vector.shape_cast %53 : vector<8x8xf32> to vector<1x1x8x8xf32>
    tpu.vector_store %arg16[%c0_39, %c0_40, %c0_41, %c0_42], %56 {strides = array<i32>} : memref<1x1x8x8xf32, #tpu.memory_space<vmem>>, vector<1x1x8x8xf32>,
    %57 = arith.truncf %53 : vector<8x8xf32> to vector<8x8xbf16>
    %58 = arith.truncf %35 : vector<8x8xf32> to vector<8x8xbf16>
    %cst_43 = arith.constant dense<0.000000e+00> : vector<8x8xf32>
    %59 = tpu.matmul %57, %58, %cst_43 {dimension_numbers = #tpu.dot_dimension_numbers<[1], [0], [0], [1], [0, 0, 1, 1], [], []>} : vector<8x8xbf16>, vector<8x8xbf16>, vector<8x8xf32> -> vector<8x8xf32>
    %60 = arith.truncf %59 : vector<8x8xf32> to vector<8x8xbf16>
    %cst_44 = arith.constant dense<0.000000e+00> : vector<8x32xf32>
    %61 = tpu.matmul %60, %20, %cst_44 {dimension_numbers = #tpu.dot_dimension_numbers<[1], [0], [0], [1], [0, 0, 1, 1], [], []>} : vector<8x8xbf16>, vector<8x32xbf16>, vector<8x32xf32> -> vector<8x32xf32>
    %c0_i32 = arith.constant 0 : i32
    %62 = arith.cmpi eq, %arg2, %c0_i32 : i32
    %63 = arith.extui %62 : i1 to i32
    %c0_i32_45 = arith.constant 0 : i32
    %64 = arith.cmpi ne, %63, %c0_i32_45 : i32
    scf.if %64 {
      %c0_48 = arith.constant 0 : index
      %c0_49 = arith.constant 0 : index
      %68 = vector.load %arg14[%c0_48, %c0_49] : memref<1x32xf32, #tpu.memory_space<vmem>>, vector<1x32xf32>
      %69 = vector.broadcast %68 : vector<1x32xf32> to vector<8x32xf32>
      %70 = arith.addf %61, %69 : vector<8x32xf32>
      %c0_50 = arith.constant 0 : index
      %c0_51 = arith.constant 0 : index
      %c0_52 = arith.constant 0 : index
      %71 = vector.load %arg15[%c0_50, %c0_51, %c0_52] : memref<1x8x32xf32, #tpu.memory_space<vmem>>, vector<1x8x32xf32>
      %72 = vector.shape_cast %71 : vector<1x8x32xf32> to vector<8x32xf32>
      %73 = vector.shape_cast %70 : vector<8x32xf32> to vector<1x8x32xf32>
      tpu.vector_store %arg15[%c0_50, %c0_51, %c0_52], %73 {strides = array<i32>} : memref<1x8x32xf32, #tpu.memory_space<vmem>>, vector<1x8x32xf32>,
    } else {
    }
    %c0_i32_46 = arith.constant 0 : i32
    %65 = arith.cmpi ne, %arg2, %c0_i32_46 : i32
    %66 = arith.extui %65 : i1 to i32
    %c0_i32_47 = arith.constant 0 : i32
    %67 = arith.cmpi ne, %66, %c0_i32_47 : i32
    scf.if %67 {
      %c0_48 = arith.constant 0 : index
      %c0_49 = arith.constant 0 : index
      %c0_50 = arith.constant 0 : index
      %68 = vector.load %arg15[%c0_48, %c0_49, %c0_50] : memref<1x8x32xf32, #tpu.memory_space<vmem>>, vector<1x8x32xf32>
      %69 = vector.shape_cast %68 : vector<1x8x32xf32> to vector<8x32xf32>
      %70 = arith.addf %69, %61 : vector<8x32xf32>
      %c0_51 = arith.constant 0 : index
      %c0_52 = arith.constant 0 : index
      %c0_53 = arith.constant 0 : index
      %71 = vector.load %arg15[%c0_51, %c0_52, %c0_53] : memref<1x8x32xf32, #tpu.memory_space<vmem>>, vector<1x8x32xf32>
      %72 = vector.shape_cast %71 : vector<1x8x32xf32> to vector<8x32xf32>
      %73 = vector.shape_cast %70 : vector<8x32xf32> to vector<1x8x32xf32>
      tpu.vector_store %arg15[%c0_51, %c0_52, %c0_53], %73 {strides = array<i32>} : memref<1x8x32xf32, #tpu.memory_space<vmem>>, vector<1x8x32xf32>,
    } else {
    }
    return
  }
  func.func @transform_0(%arg0: i32, %arg1: i32, %arg2: i32) -> (i32, i32, i32) {
    %c0_i32 = arith.constant 0 : i32
    %c0_i32_0 = arith.constant 0 : i32
    return %arg0, %arg1, %c0_i32 : i32, i32, i32
  }
  func.func @transform_1(%arg0: i32, %arg1: i32, %arg2: i32) -> (i32, i32, i32) {
    %c0_i32 = arith.constant 0 : i32
    %c0_i32_0 = arith.constant 0 : i32
    %c0_i32_1 = arith.constant 0 : i32
    return %arg0, %c0_i32, %c0_i32_0 : i32, i32, i32
  }
  func.func @transform_2(%arg0: i32, %arg1: i32, %arg2: i32) -> (i32, i32, i32) {
    %c0_i32 = arith.constant 0 : i32
    %c0_i32_0 = arith.constant 0 : i32
    %c0_i32_1 = arith.constant 0 : i32
    return %arg0, %c0_i32, %c0_i32_0 : i32, i32, i32
  }
  func.func @transform_3(%arg0: i32, %arg1: i32, %arg2: i32) -> (i32, i32, i32, i32) {
    %c0_i32 = arith.constant 0 : i32
    %c0_i32_0 = arith.constant 0 : i32
    return %arg0, %arg2, %arg1, %c0_i32 : i32, i32, i32, i32
  }
  func.func @transform_4(%arg0: i32, %arg1: i32, %arg2: i32) -> (i32, i32, i32) {
    %c0_i32 = arith.constant 0 : i32
    %c0_i32_0 = arith.constant 0 : i32
    %c0_i32_1 = arith.constant 0 : i32
    return %arg2, %c0_i32, %c0_i32_0 : i32, i32, i32
  }
  func.func @transform_5(%arg0: i32, %arg1: i32, %arg2: i32) -> (i32, i32, i32) {
    %c0_i32 = arith.constant 0 : i32
    %c0_i32_0 = arith.constant 0 : i32
    %c0_i32_1 = arith.constant 0 : i32
    return %arg2, %c0_i32, %c0_i32_0 : i32, i32, i32
  }
  func.func @transform_6(%arg0: i32, %arg1: i32, %arg2: i32) -> (i32, i32, i32) {
    %c0_i32 = arith.constant 0 : i32
    %c0_i32_0 = arith.constant 0 : i32
    %c0_i32_1 = arith.constant 0 : i32
    return %arg2, %c0_i32, %c0_i32_0 : i32, i32, i32
  }
  func.func @transform_7(%arg0: i32, %arg1: i32, %arg2: i32) -> (i32, i32, i32) {
    %c0_i32 = arith.constant 0 : i32
    %c0_i32_0 = arith.constant 0 : i32
    %c0_i32_1 = arith.constant 0 : i32
    return %arg2, %c0_i32, %c0_i32_0 : i32, i32, i32
  }
  func.func @transform_8(%arg0: i32, %arg1: i32, %arg2: i32) -> (i32, i32, i32) {
    %c0_i32 = arith.constant 0 : i32
    %c0_i32_0 = arith.constant 0 : i32
    %c0_i32_1 = arith.constant 0 : i32
    return %arg2, %c0_i32, %c0_i32_0 : i32, i32, i32
  }
  func.func @transform_9(%arg0: i32, %arg1: i32, %arg2: i32) -> (i32, i32, i32) {
    %c0_i32 = arith.constant 0 : i32
    %c0_i32_0 = arith.constant 0 : i32
    %c0_i32_1 = arith.constant 0 : i32
    return %arg2, %c0_i32, %c0_i32_0 : i32, i32, i32
  }
  func.func @transform_10(%arg0: i32, %arg1: i32, %arg2: i32) -> (i32, i32, i32) {
    %c0_i32 = arith.constant 0 : i32
    %c0_i32_0 = arith.constant 0 : i32
    %c0_i32_1 = arith.constant 0 : i32
    return %arg2, %c0_i32, %c0_i32_0 : i32, i32, i32
  }
  func.func @transform_11(%arg0: i32, %arg1: i32, %arg2: i32) -> (i32, i32) {
    %c0_i32 = arith.constant 0 : i32
    %c0_i32_0 = arith.constant 0 : i32
    %c0_i32_1 = arith.constant 0 : i32
    return %c0_i32, %c0_i32_0 : i32, i32
  }
  func.func @transform_12(%arg0: i32, %arg1: i32, %arg2: i32) -> (i32, i32, i32) {
    %c0_i32 = arith.constant 0 : i32
    %c0_i32_0 = arith.constant 0 : i32
    return %arg0, %arg1, %c0_i32 : i32, i32, i32
  }
  func.func @transform_13(%arg0: i32, %arg1: i32, %arg2: i32) -> (i32, i32, i32, i32) {
    %c0_i32 = arith.constant 0 : i32
    %c0_i32_0 = arith.constant 0 : i32
    return %arg0, %arg2, %arg1, %c0_i32 : i32, i32, i32, i32
  }
}

</mosaic_0001>

<bundles_post_ra>
// kernel: tpu_custom_call.1
= control target key start
LH: loop header
LB: loop body
LE: loop exit
PB: predicated region body
PF: predicated region fallthrough
CT: control target
= control target key end

     0   :  { %s2038_s0 = inlined_call_operand.vmem [shape: f32[2,8,32], index: 0, kind: input, shape index: {}]   ;;  %s2039_s1 = inlined_call_operand.vmem [shape: f32[2,8,32], index: 1, kind: input, shape index: {}]   ;;  %s2040_s2 = inlined_call_operand.vmem [shape: f32[2,8,32], index: 2, kind: input, shape index: {}]   ;;  %s2041_s3 = inlined_call_operand.vmem [shape: f32[2,4,8,8], index: 3, kind: input, shape index: {}]   ;;  %s2042_s4 = inlined_call_operand.vmem [shape: f32[4,32,8], index: 4, kind: input, shape index: {}]   ;;  %s2043_s5 = inlined_call_operand.vmem [shape: f32[4,1,8], index: 5, kind: input, shape index: {}]   ;;  %s2044_s6 = inlined_call_operand.vmem [shape: f32[4,32,8], index: 6, kind: input, shape index: {}]   ;;  %s2045_s7 = inlined_call_operand.vmem [shape: f32[4,1,8], index: 7, kind: input, shape index: {}]   ;;  %s2046_s8 = inlined_call_operand.vmem [shape: f32[4,32,8], index: 8, kind: input, shape index: {}]   ;;  %s2047_s9 = inlined_call_operand.vmem [shape: f32[4,1,8], index: 9, kind: input, shape index: {}]   ;;  %s2048_s10 = inlined_call_operand.vmem [shape: f32[4,8,32], index: 10, kind: input, shape index: {}]   ;;  %s2049_s11 = inlined_call_operand.vmem [shape: f32[1,32], index: 11, kind: input, shape index: {}]   ;;  %s2050_s12 = inlined_call_operand.hbm [shape: f32[2,8,32], index: 12, kind: output, shape index: {0}]   ;;  %s2051_s13 = inlined_call_operand.hbm [shape: f32[2,4,8,8], index: 13, kind: output, shape index: {1}]  }
   0x1   :  { %2065 = sst [smem:[#allocation15_spill]] %s2038_s0 }
   0x2   :  { %2066 = sst [smem:[#allocation16_spill]] %s2039_s1 }
   0x3   :  { %2067 = sst [smem:[#allocation17_spill]] %s2040_s2 }
   0x4   :  { %2068 = sst [smem:[#allocation18_spill]] %s2041_s3 }
   0x5   :  { %2069 = sst [smem:[#allocation19_spill]] %s2042_s4 }
   0x6   :  { %2070 = sst [smem:[#allocation20_spill]] %s2043_s5 }
   0x7   :  { %2071 = sst [smem:[#allocation21_spill]] %s2044_s6 }
   0x8   :  { %2072 = sst [smem:[#allocation22_spill]] %s2045_s7 }
   0x9   :  { %2073 = sst [smem:[#allocation23_spill]] %s2047_s9 }
   0xa   :  { %2074 = sst [smem:[#allocation24_spill]] %s2048_s10 }
   0xb   :  { %2075 = sst [smem:[#allocation25_spill]] %s2049_s11 }
   0xc   :  { %2076 = sst [smem:[#allocation26_spill]] %s2050_s12 }
   0xd   :  { %2077 = sst [smem:[#allocation27_spill]] %s2051_s13 }
   0xe   :  { %19 = vsyncpa [#allocation3], 0 }
   0xf   :  { %21 = vsyncpa [#allocation3 + $0x1], 0 }
  0x10   :  { %22 = vsyncpa [#allocation5], 0 }
  0x11   :  { %24 = vsyncpa [#allocation5 + $0x1], 0  ;;  %s1730_s25 = smov 0   ;;  %s1732_s26 = smov 0  }
  0x12   :  { %s1734_s27 = smov 0   ;;  %s1736_s28 = smov 0  }
  0x13   :  { %s1738_s29 = smov 0   ;;  %s1740_s30 = smov 0  }
  0x14   :  { %s1742_s14 = smov 0   ;;  %s1744_s15 = smov 0  }
  0x15   :  { %s1746_s16 = smov 0   ;;  %s1748_s17 = smov 0  }
  0x16   :  { %s1750_s18 = smov 0  }
  0x17 LB: > { %2078 = sst [smem:[#allocation8_spill]] %s1626_s28  ;;  %s1304_s19 = sadd.s32 4294967295, %s1654_s18   ;;  %s1654_s18 = sphi %s1750_s18, %s30_s18   ;;  %s1650_s17 = sphi %s1748_s17, %s2115_s17   ;;  %s1646_s16 = sphi %s1746_s16, %s2122_s16   ;;  %s1642_s15 = sphi %s1744_s15, %s2113_s15   ;;  %s1638_s14 = sphi %s1742_s14, %s2112_s14   ;;  %s1634_s30 = sphi %s1740_s30, %s2121_s30   ;;  %s1630_s29 = sphi %s1738_s29, %s2120_s29   ;;  %s1626_s28 = sphi %s1736_s28, %s2119_s28   ;;  %s1622_s27 = sphi %s1734_s27, %s2118_s27   ;;  %s1618_s26 = sphi %s1732_s26, %s2117_s26   ;;  %s1614_s25 = sphi %s1730_s25, %s2116_s25  }
  0x18   : > { %2079 = sst [smem:[#allocation9_spill]] %s1646_s16  ;;  %s1305_s20 = sadd.s32 4294967294, %s1654_s18  }
  0x19   : > { %2080 = sst [smem:[#allocation10_spill]] %s1650_s17  ;;  %s42_s21 = sadd.s32 1, %s1646_s16 }
  0x1a   : > { %s49_s22 = sadd.s32 1, %s1650_s17  ;;  %p43_p0 = scmp.ge.s32.totalorder %s42_s21, 4 }
  0x1b   : > { %s371_s23 = sadd.s32 1, %s1634_s30  ;;  %p381_p1 = scmp.ne.s32.totalorder %s1634_s30, %s1630_s29 }
  0x1c   : > { %p1792_p2 = scmp.eq.s32.totalorder %s1304_s19, 7  ;;  %s2124_s21 = smov (%p43_p0, %s42_s21), 0 }
  0x1d   : > { %2082 = sst [smem:[#allocation11_spill]] %s2124_s21  ;;  %s2126_s22 = smov (!%p43_p0, %s49_s22), %s1650_s17 }
  0x1e   : > { %p1801_p3 = por %p1792_p2, %p381_p1  ;;  %p387_p4 = scmp.ne.s32.totalorder %s1630_s29, %s1626_s28 }
  0x1f   : > { %p51_p5 = scmp.ge.s32.totalorder %s2126_s22, 2  ;;  %p1807_p6 = scmp.eq.s32.totalorder %s1305_s20, 7 }
  0x20   : > { %s2083_s13 = scalar_select %p1801_p3, 1, 0 }
  0x21   : > { %s395_s12 = ssub.s32 %s1646_s16, %s2124_s21  ;;  %s401_s11 = sadd.s32 1, %s1622_s27 }
  0x22   : > { %2084 = sst [smem:[#allocation12_spill]] %s2083_s13  ;;  %s2128_s22 = smov (%p51_p5, %s2126_s22), 0 }
  0x23   : > { %2086 = sst [smem:[#allocation13_spill]] %s2128_s22  ;;  %p1818_p7 = por %p1807_p6, %p387_p4 }
  0x24   : > { %p411_p8 = scmp.ne.s32.totalorder %s1622_s27, %s1618_s26  ;;  %s366_s28 = ssub.s32 %s1650_s17, %s2128_s22 }
  0x25   : > { %s2087_s10 = scalar_select %p1818_p7, 1, 0 }
  0x26   : > { %p417_p9 = scmp.ne.s32.totalorder %s1618_s26, %s1614_s25  ;;  %p369_p10 = scmp.eq.s32.totalorder %s366_s28, 0 }
  0x27   : > { %s396_s20 = sor.u32 %s395_s12, %s366_s28  ;;  %p1830_p12 = por %p411_p8, %p1792_p2 }
  0x28   : > { %p399_p11 = scmp.eq.s32.totalorder %s396_s20, 0  ;;  %p1842_p13 = por %p417_p9, %p1807_p6 }
  0x29   : > { %s1835_s21 = scalar_select %p369_p10, %s1634_s30, %s371_s23  }
  0x2a   : > { %s1838_s16 = scalar_select %p399_p11, %s1622_s27, %s401_s11  }
  0x2b   : > { %2089 = sst [smem:[#allocation14_spill]] %s1835_s21  ;;  %p1308_p0 = scmp.ge.s32.totalorder %s1654_s18, 1 }
  0x2c   : > { %s2090_s9 = scalar_select %p1842_p13, 1, 0 }
  0x2d   : > { %p526_p1 = scmp.lt.s32.totalorder %s1654_s18, 9 }
  0x2f   : > { %p527_p4 = pnand %p1308_p0, %p526_p1 }
  0x30   : > { %p641_p2 = scmp.lt.s32.totalorder (!%p527_p4), %s1638_s14, 3  ;;  %s2059_s12 = sand.u32 (!%p527_p4), 1, %s1630_s29  }
  0x31   : > { %530 = sbr.rel (%p527_p4) target bundleno = 1245 (0x4dd), region = 68  ;;  %s1853_s11 = sshll.u32 (!%p527_p4), %s2059_s12, 3 }
  0x32   : > { %p624_p5 = scmp.lt.s32.totalorder (!%p527_p4), %s1642_s15, 1  ;;  %s2091_s6 = sld [smem:[#allocation21_spill]] (!%p527_p4) }
  0x33   : > { %s2092_s4 = sld [smem:[#allocation19_spill]] (!%p527_p4)  ;;  %p1332_p6 = scmp.ne.s32.totalorder (!%p527_p4), %s1638_s14, 0 }
  0x34   : > { %s2093_s1 = sld [smem:[#allocation16_spill]] (!%p527_p4) }
  0x35   : > { %s2094_s0 = sld [smem:[#allocation15_spill]] (!%p527_p4) }
  0x36   : > { %v1656_v0 = vmov 0.0   ;;  %s1857_s28 = scalar_select %p641_p2, %s1638_s14, 3  ;;  %vm1657_vm0 = vmmov 0   ;;  %vm712_vm1 = vcmask 261120   ;;  %vm858_vm2 = vcmask 64512  }
  0x37   : > { %1368 = vmatprep.subr.bf16.mxu1 %v1656_v0  ;;  %1360 = vmatprep.subr.bf16.mxu0 %v1656_v0  ;;  %s1876_s21 = scalar_select %p624_p5, %s1642_s15, 1  ;;  %vm925_vm3 = vcmask 1043456  }
  0x38   : > { %1372 = vmatprep.mubr.msk.bf16.mxu1 %vm1657_vm0, %v1656_v0  ;;  %1364 = vmatprep.mubr.msk.bf16.mxu0 %vm1657_vm0, %v1656_v0  ;;  %s1865_s23 = sshll.u32 %s1857_s28, 5  ;;  %s2095_s7 = sld [smem:[#allocation22_spill]] }
  0x39   : > { %s662_s20 = scalar_lea.vmem %s2091_s6, %s1865_s23  ;;  %s654_s17 = scalar_lea.vmem %s2092_s4, %s1865_s23 }
  0x3a   : > { %v693_v1 = vld [vmem:[%s662_s20 + $0x10] sm:$0xff]  ;;  %v694_v2 = vld [vmem:[%s662_s20 + $0x18] sm:$0xff]  ;;  %v691_v3 = vld [vmem:[%s662_s20] sm:$0xff]  ;;  %s1879_s24 = sshll.u32 %s1876_s21, 3  ;;  %s2096_s5 = sld [smem:[#allocation20_spill]] }
  0x3b   : > { %v696_v4 = vpack.c.bf16 %v694_v2, %v693_v1  ;;  %v687_v5 = vld [vmem:[%s654_s17 + $0x10] sm:$0xff]  ;;  %v688_v6 = vld [vmem:[%s654_s17 + $0x18] sm:$0xff]  ;;  %v692_v7 = vld [vmem:[%s662_s20 + $0x8] sm:$0xff]  ;;  %s634_s19 = scalar_lea.vmem %s2093_s1, %s1879_s24  ;;  %s630_s6 = scalar_lea.vmem %s2094_s0, %s1879_s24 }
  0x3c   : > { %v690_v8 = vpack.c.bf16 %v688_v6, %v687_v5  ;;  %v685_v9 = vld [vmem:[%s654_s17] sm:$0xff]  ;;  %v686_v10 = vld [vmem:[%s654_s17 + $0x8] sm:$0xff]  ;;  %v695_v11 = vpack.c.bf16 %v692_v7, %v691_v3  ;;  %s2097_s2 = sld [smem:[#allocation17_spill]] }
  0x3d   : > { %1369 = vmatpush3.bf16.msra.mxu1 %v696_v4  ;;  %v689_v12 = vpack.c.bf16 %v686_v10, %v685_v9  ;;  %v681_v13 = vld [vmem:[%s634_s19] sm:$0xff]  ;;  %s2098_s3 = sld [smem:[#allocation18_spill]] }
  0x3e   : > { %1361 = vmatpush3.bf16.msra.mxu0 %v690_v8  ;;  %1370 = vmatprep.subr.bf16.mxu1 %v1656_v0  ;;  %v679_v14 = vld [vmem:[%s630_s6] sm:$0xff]  ;;  %v682_v15 = vpack.c.bf16 %v681_v13, %v681_v13  ;;  %s665_s17 = scalar_lea.vmem %s2095_s7, %s1857_s28  ;;  %s670_s6 = scalar_lea.vmem %s2046_s8, %s1865_s23 }
  0x3f   : > { %1362 = vmatprep.subr.bf16.mxu0 %v1656_v0  ;;  %v680_v16 = vpack.c.bf16 %v679_v14, %v679_v14  ;;  %v1325_v17 = vld [vmem:[%s665_s17] ss:$0 sm:$0xff]  ;;  %v699_v32 = vld [vmem:[%s670_s6 + $0x10] sm:$0xff]  ;;  %v700_v33 = vld [vmem:[%s670_s6 + $0x18] sm:$0xff]  ;;  %s1314_s23 = sshll.u32 %s1876_s21, 2  ;;  %s2099_s22 = sld [smem:[#allocation23_spill]] }
  0x40   : > { %s657_s19 = scalar_lea.vmem %s2096_s5, %s1857_s28  ;;  %v697_v34 = vld [vmem:[%s670_s6] sm:$0xff]  ;;  %v702_v35 = vpack.c.bf16 %v700_v33, %v699_v32  ;;  %v698_v36 = vld [vmem:[%s670_s6 + $0x8] sm:$0xff]  ;;  %s616_s17 = scalar_lea.vmem [#allocation2], %s1853_s11 }
  0x41   : > { %1371 = vmatpush3.bf16.msra.mxu1 %v695_v11  ;;  %v1323_v22 = vld [vmem:[%s657_s19] ss:$0 sm:$0xff]  ;;  %v701_v37 = vpack.c.bf16 %v698_v36, %v697_v34  ;;  %s647_s19 = sadd.s32 %s1314_s23, %s1857_s28  ;;  %s1322_s23 = sshll.u32 %s1857_s28, 3 }
  0x42   : > { %1363 = vmatpush3.bf16.msra.mxu0 %v689_v12  ;;  %1384 = vmatprep.subr.bf16.mxu1 %v1656_v0  ;;  %s638_s12 = scalar_lea.vmem %s2097_s2, %s1879_s24  ;;  %s1315_s20 = sshll.u32 %s647_s19, 3 }
  0x43   : > { %1376 = vmatprep.subr.bf16.mxu0 %v1656_v0  ;;  %v683_v38 = vld [vmem:[%s638_s12] sm:$0xff]  ;;  %s649_s6 = scalar_lea.vmem %s2098_s3, %s1315_s20  ;;  %s2100_s24 = sld [smem:[#allocation24_spill]] }
  0x44   : > { %1373 = vmatmul.mubr.msk.bf16.vlgmr.msra.gmra.mxu1 %vm712_vm1, %v682_v15  ;;  %v684_v39 = vpack.c.bf16 %v683_v38, %v683_v38  ;;  %v906_v41 = vld [vmem:[%s649_s6] sm:$0xff]  ;;  %s2062_s6 = sand.u32 1, %s1618_s26  }
  0x45   : > { %1365 = vmatmul.mubr.msk.bf16.vlgmr.msra.gmra.mxu0 %vm712_vm1, %v680_v16  ;;  %1386 = vmatprep.mubr.msk.bf16.mxu1 %vm1657_vm0, %v1656_v0  ;;  %s673_s12 = scalar_lea.vmem %s2099_s22, %s1857_s28  ;;  %s1943_s21 = sshll.u32 %s2062_s6, 3 }
  0x46   : > { %1380 = vmatprep.mubr.msk.bf16.mxu0 %vm1657_vm0, %v1656_v0  ;;  %1377 = vmatpush3.bf16.msra.mxu0 %v702_v35  ;;  %v1327_v56 = vld [vmem:[%s673_s12] ss:$0 sm:$0xff]  ;;  %s2063_s28 = scalar_lea.vmem [#allocation4], %s1943_s21 }
  0x47   : > { %1378 = vmatprep.subr.bf16.mxu0 %v1656_v0 }
  0x49   : > { %s677_s4 = scalar_lea.vmem %s2100_s24, %s1322_s23  ;;  %s2101_s23 = sld [smem:[#allocation25_spill]] (!%p1332_p6) }
  0x4a   : > { %1379 = vmatpush3.bf16.msra.mxu0 %v701_v37  ;;  %v703_v61 = vld [vmem:[%s677_s4] sm:$0xff] }
  0x4b   : > { %1390 = vmatprep.subr.bf16.mxu0 %v1656_v0  ;;  %v704_v62 = vpack.c.bf16 %v703_v61, %v703_v61 }
  0x4d   : > { %1381 = vmatmul.mubr.msk.bf16.vlgmr.msra.gmra.mxu0 %vm712_vm1, %v684_v39  ;;  %v974_v63 = vsel %vm925_vm3, %v704_v62, 0 }
  0x4e   : > { %1392 = vmatprep.mubr.msk.bf16.mxu0 %vm1657_vm0, %v1656_v0 }
 0x104   : > { %v800_v18 = vpop.f32.mrf.mxu1 }
 0x105   : > { %v801_v19 = vadd.f32 %v1325_v17, %v800_v18  ;;  %v750_v20 = vpop.f32.mrf.mxu0 }
 0x106   : > { %v1374_v21 = vpop.f32.mrf.mxu1  ;;  %v751_v27 = vadd.f32 %v1323_v22, %v750_v20 }
 0x107   : > { %v857_v23 = vpack.c.bf16 %v801_v19, %v801_v19  ;;  %v1366_v24 = vpop.f32.mrf.mxu0 }
 0x108   : > { %v803_v25 = vpop.f32.mrf.mxu1  ;;  %v856_v31 = vpack.c.bf16 %v751_v27, %v751_v27 }
 0x109   : > { %v863_v26 = vsel %vm858_vm2, %v857_v23, 0  ;;  %v753_v28 = vpop.f32.mrf.mxu0 }
 0x10a   : > { %v1375_v29 = vpop.f32.mrf.mxu1  ;;  %1385 = vmatpush3.bf16.xpose.msra.mxu1 %v863_v26 }
 0x10b   : > { %v1367_v30 = vpop.f32.mrf.mxu0  ;;  %1396 = vmatprep.subr.bf16.mxu1 %v1656_v0 }
 0x10d   : > { %v850_v53 = vpop.f32.mrf.mxu0 }
 0x10e   : > { %v851_v58 = vadd.f32 %v1327_v56, %v850_v53 }
 0x10f   : > { %v1382_v54 = vpop.f32.mrf.mxu0 }
 0x110   : > { %v921_v59 = vpack.c.bf16 %v851_v58, %v851_v58 }
 0x111   : > { %1387 = vmatmul.mubr.msk.bf16.vlgmr.msra.gmra.mxu1 %vm858_vm2, %v856_v31  ;;  %v853_v55 = vpop.f32.mrf.mxu0 }
 0x112   : > { %1398 = vmatprep.mubr.msk.bf16.mxu1 %vm1657_vm0, %v1656_v0  ;;  %v927_v60 = vsel %vm925_vm3, %v921_v59, 0  ;;  %1397 = vmatpush3.bf16.msra.mxu1 %v974_v63 }
 0x113   : > { %v1383_v57 = vpop.f32.mrf.mxu0  ;;  %1391 = vmatpush3.bf16.msra.mxu0 %v927_v60 }
 0x1d1   : > { %v899_v40 = vpop.f32.mrf.mxu1 }
 0x1d2   : > { %v905_v42 = vmul.f32 0.35355338, %v899_v40 }
 0x1d3   : > { %v1388_v43 = vpop.f32.mrf.mxu1 }
 0x1d4   : > { %v907_v44 = vadd.f32 %v906_v41, %v905_v42 }
 0x1d5   : > { %v902_v45 = vpop.f32.mrf.mxu1 }
 0x1d6   : > { %v908_v46 = vsel %vm858_vm2, %v907_v44, -inf }
 0x1d7   : > { %909 = vmax.xlane.f32.xlu0 %v908_v46  ;;  %v1389_v47 = vpop.f32.mrf.mxu1 }
 0x260   : > { %v910_v48 = vpop.xlane.xlu0 %909 }
 0x261   : > { %v911_v49 = vsub.f32 %v907_v44, %v910_v48 }
 0x263   : > { %v912_v50 = vmul.f32 1.442695, %v911_v49 }
 0x265   : > { %1504 = vpow2.f32 %v912_v50 }
 0x272   : > { %v1505_v51 = vpop.eup %1504 }
 0x273   : > { %v914_v52 = vsel %vm858_vm2, %v1505_v51, 0.0 }
 0x274   : > { %915 = vadd.xlane.f32.xlu0 %v914_v52 }
 0x2fd   : > { %v916_v0 = vpop.xlane.xlu0 %915 }
 0x2fe   : > { %1506 = vrcp.f32 %v916_v0 }
 0x30b   : > { %v1507_v1 = vpop.eup %1506 }
 0x30c   : > { %v918_v2 = vmul.f32 %v1507_v1, %v1505_v51 }
 0x30e   : > { %919 = vst.msk [vmem:[%s2063_s28] sm:$0xff] %vm858_vm2, %v918_v2  ;;  %v920_v3 = vpack.c.bf16 %v918_v2, %v918_v2 }
 0x310   : > { %1393 = vmatmul.mubr.msk.bf16.vlgmr.msra.gmra.mxu0 %vm858_vm2, %v920_v3 }
 0x3d0   : > { %v963_v4 = vpop.f32.mrf.mxu0 }
 0x3d1   : > { %v969_v5 = vpack.c.bf16 %v963_v4, %v963_v4 }
 0x3d2   : > { %v1394_v6 = vpop.f32.mrf.mxu0 }
 0x3d3   : > { %1399 = vmatmul.mubr.msk.bf16.vlgmr.msra.gmra.mxu1 %vm858_vm2, %v969_v5 }
 0x3d4   : > { %v966_v7 = vpop.f32.mrf.mxu0 }
 0x3d6   : > { %v1395_v8 = vpop.f32.mrf.mxu0 }
 0x493   : > { %v1010_v9 = vpop.f32.mrf.mxu1 }
 0x495   : > { %v1400_v10 = vpop.f32.mrf.mxu1  ;;  %1019 = sbr.rel (%p1332_p6) target bundleno = 1182 (0x49e), region = 72 }
 0x497   : > { %v1013_v11 = vpop.f32.mrf.mxu1 }
 0x499   : > { %v1401_v12 = vpop.f32.mrf.mxu1 }
 0x49a   : > { %v1333_v13 = vld [vmem:[%s2101_s23] ss:$0 sm:$0xff] }
 0x49b   : > { %v1027_v14 = vadd.f32 %v1333_v13, %v1010_v9 }
 0x49d   : > { %1028 = vst.msk [vmem:[%s616_s17] sm:$0xff] %vm712_vm1, %v1027_v14 }
 0x49e PF: > { %p1334_p8 = scmp.eq.s32.totalorder %s1638_s14, 0 }
 0x4a0   : > { %1032 = sbr.rel (%p1334_p8) target bundleno = 1193 (0x4a9), region = 76 }
 0x4a5   : > { %v1033_v15 = vld [vmem:[%s616_s17] sm:$0xff] }
 0x4a6   : > { %v1034_v16 = vadd.f32 %v1033_v15, %v1010_v9 }
 0x4a8   : > { %1035 = vst.msk [vmem:[%s616_s17] sm:$0xff] %vm712_vm1, %v1034_v16 }
 0x4a9 PF: > { %s1337_s19 = sshll.u32 %s1642_s15, 7  ;;  %s2103_s4 = sld [smem:[#allocation26_spill]] }
 0x4aa   : > { %s1056_s12 = sshll.u32 %s616_s17, 4  ;;  %s2104_s23 = sand.u32 1, %s1630_s29   ;;  %s1057_s12 = int_to_ptr.vmem [resolvable:$true] %s1056_s12 }
 0x4ab   : > { %s1037_s6 = scalar_lea.sflag [#allocation3], %s2104_s23  ;;  %s1508_s28 = scalar_lea.vmem %s1057_s12, 128 }
 0x4ac   : > { %p1509_p9 = scmp.ne.s32.totalorder %s1057_s12, %s1508_s28  ;;  %s1658_s0 = smov [#allocation2]  }
 0x4ad   : > { %s1512_s1 = sshll.u32 %s1658_s0, 4  ;;  %s1513_s1 = int_to_ptr.vmem [resolvable:$false] %s1512_s1 }
 0x4ae   : > { %p1510_p10 = pnand %p1509_p9, %p1801_p3  ;;  %s1514_s2 = scalar_lea.vmem %s1513_s1, 256 }
 0x4af   : > { %s1054_s22 = scalar_lea.hbm %s2103_s4, %s1337_s19  ;;  %p1515_p0 = scmp.lt.s32.totalorder %s1057_s12, %s1513_s1 }
 0x4b0   : > { %p1511_p11 = pneg %p1510_p10  ;;  %p1516_p1 = scmp.lt.s32.totalorder %s1514_s2, %s1508_s28 }
 0x4b2   : > { %p1517_p4 = por %p1516_p1, %p1515_p0 }
 0x4b4   : > { %p1518_p2 = pnand %p1517_p4, %p1511_p11 }
 0x4b6   : > { %1521 = shalt.err (!%p1518_p2)
}
 0x4b7   : > { %s1522_s20 = scalar_lea.hbm %s1054_s22, 128  ;;  %s1526_s24 = scalar_lea.hbm %s2103_s4, 256 }
 0x4b8   : > { %p1523_p5 = scmp.ne.s32.totalorder %s1054_s22, %s1522_s20  ;;  %p1527_p9 = scmp.lt.s32.totalorder %s1054_s22, %s2103_s4 }
 0x4b9   : > { %p1528_p10 = scmp.lt.s32.totalorder %s1526_s24, %s1522_s20 }
 0x4ba   : > { %p1524_p6 = pnand %p1523_p5, %p1801_p3 }
 0x4bb   : > { %p1529_p13 = por %p1528_p10, %p1527_p9 }
 0x4bc   : > { %p1525_p8 = pneg %p1524_p6 }
 0x4be   : > { %p1530_p7 = pnand %p1529_p13, %p1525_p8 }
 0x4c0   : > { %1533 = shalt.err (!%p1530_p7)
}
 0x4c1   : > { %1402 = dma.vmem_to_hbm [thread:$0]  (%p1801_p3), %s1057_s12, 128, %s1054_s22, %s1037_s6  }
 0x4c2   : > { %s1338_s0 = sshll.u32 %s1642_s15, 2  ;;  %s2105_s1 = scalar_lea.vmem [#allocation4], %s1943_s21 }
 0x4c3   : > { %s1072_s2 = sshll.u32 %s2105_s1, 4  ;;  %s1068_s28 = sadd.s32 %s1638_s14, %s1338_s0  ;;  %s1073_s2 = int_to_ptr.vmem [resolvable:$true] %s1072_s2 }
 0x4c4   : > { %s1339_s17 = sshll.u32 %s1068_s28, 7  ;;  %s2106_s20 = sld [smem:[#allocation27_spill]] }
 0x4c5   : > { %s2107_s23 = sand.u32 1, %s1618_s26   ;;  %s1534_s5 = scalar_lea.vmem %s1073_s2, 128 }
 0x4c6   : > { %s1042_s4 = scalar_lea.sflag [#allocation5], %s2107_s23  ;;  %p1535_p7 = scmp.ne.s32.totalorder %s1073_s2, %s1534_s5 }
 0x4c7   : > { %s1659_s11 = smov [#allocation4]  }
 0x4c8   : > { %p1536_p13 = pnand %p1535_p7, %p1830_p12  ;;  %s1538_s7 = sshll.u32 %s1659_s11, 4  ;;  %s1539_s7 = int_to_ptr.vmem [resolvable:$false] %s1538_s7 }
 0x4c9   : > { %s1540_s15 = scalar_lea.vmem %s1539_s7, 256  ;;  %p1541_p3 = scmp.lt.s32.totalorder %s1073_s2, %s1539_s7 }
 0x4ca   : > { %s1070_s24 = scalar_lea.hbm %s2106_s20, %s1339_s17  ;;  %p1537_p11 = pneg %p1536_p13 }
 0x4cb   : > { %p1542_p0 = scmp.lt.s32.totalorder %s1540_s15, %s1534_s5 }
 0x4cd   : > { %p1543_p1 = por %p1542_p0, %p1541_p3 }
 0x4cf   : > { %p1544_p4 = pnand %p1543_p1, %p1537_p11 }
 0x4d1   : > { %1547 = shalt.err (!%p1544_p4)
}
 0x4d2   : > { %s1548_s14 = scalar_lea.hbm %s1070_s24, 128  ;;  %s1552_s22 = scalar_lea.hbm %s2106_s20, 1024 }
 0x4d3   : > { %p1549_p2 = scmp.ne.s32.totalorder %s1070_s24, %s1548_s14  ;;  %p1553_p8 = scmp.lt.s32.totalorder %s1070_s24, %s2106_s20 }
 0x4d4   : > { %p1554_p9 = scmp.lt.s32.totalorder %s1552_s22, %s1548_s14 }
 0x4d5   : > { %p1550_p5 = pnand %p1549_p2, %p1830_p12 }
 0x4d6   : > { %p1555_p10 = por %p1554_p9, %p1553_p8 }
 0x4d7   : > { %p1551_p6 = pneg %p1550_p5 }
 0x4d9   : > { %p1556_p7 = pnand %p1555_p10, %p1551_p6 }
 0x4db   : > { %1559 = shalt.err (!%p1556_p7)
}
 0x4dc   : > { %1403 = dma.vmem_to_hbm [thread:$0]  (%p1830_p12), %s1073_s2, 128, %s1070_s24, %s1042_s4  }
 0x4dd PF: > { %s2108_s5 = sld [smem:[#allocation8_spill]]  ;;  %p1413_p13 = scmp.ge.s32.totalorder %s1654_s18, 2 }
 0x4de   : > { %p2109_p11 = scmp.ne.s32.totalorder %s2087_s10, 0 }
 0x4e0   : > { %p1407_p3 = pnand %p1413_p13, %p2109_p11 }
 0x4e2   : > { %p1408_p0 = pneg %p1407_p3 }
 0x4e3   : > { %s1084_s7 = sand.u32 1, %s2108_s5  }
 0x4e4   : > { %s1085_s1 = scalar_lea.sflag [#allocation3], %s1084_s7 }
 0x4e5   : > { %1605 = dma.done.wait (%p1408_p0), %s1085_s1, 128  }
 0x4e6   : > { %1607 = vsyncadd (%p1408_p0), %s1085_s1, 4294967168  ;;  %s1093_s28 = sand.u32 1, %s1614_s25   ;;  %p2110_p1 = scmp.ne.s32.totalorder %s2090_s9, 0 }
 0x4e7   : > { %s1094_s13 = scalar_lea.sflag [#allocation5], %s1093_s28 }
 0x4e8   : > { %p1410_p4 = pnand %p1413_p13, %p2110_p1 }
 0x4ea   : > { %p1411_p2 = pneg %p1410_p4 }
 0x4ec   : > { %1609 = dma.done.wait (%p1411_p2), %s1094_s13, 128  }
 0x4ed   : > { %1611 = vsyncadd (%p1411_p2), %s1094_s13, 4294967168  ;;  %s30_s18 = sadd.s32 1, %s1654_s18   ;;  %s2111_s10 = sld [smem:[#allocation14_spill]] }
 0x4ee   : > { %p27_p12 = scmp.ge.s32.totalorder %s30_s18, 10   ;;  %s2112_s14 = sld [smem:[#allocation9_spill]] }
 0x4ef   : > { %s2113_s15 = sld [smem:[#allocation10_spill]]  ;;  %s2116_s25 = smov %s1618_s26 }
 0x4f0   : > { %s2114_s4 = sld [smem:[#allocation11_spill]]  ;;  %s2117_s26 = smov %s1622_s27 }
 0x4f1   : > { %s2115_s17 = sld [smem:[#allocation13_spill]]  ;;  %s2118_s27 = smov %s1838_s16 }
 0x4f2   : > { %s2119_s28 = smov %s1630_s29  ;;  %s2120_s29 = smov %s1634_s30 }
 0x4f3   : > { %s2121_s30 = smov %s2111_s10  ;;  %29 = sbr.rel (!%p27_p12) target bundleno = 23 (0x17), region = 158 }
 0x4f6   : > { %s2122_s16 = smov %s2114_s4 }
 0x4f8   :  { %1099 = vsyncpa [#allocation3], 1 }
 0x4f9   :  { %1101 = vsyncpa [#allocation3 + $0x1], 1 }
 0x4fa   :  { %1102 = vsyncpa [#allocation5], 1 }
 0x4fb   :  { %1104 = vsyncpa [#allocation5 + $0x1], 1 }

</bundles_post_ra>
